<compile_context>
chip_gen: v5e
topology: v5e:2x2
jax: 0.10.0
libtpu: 0.0.40
codegen_flags: <defaults>
</compile_context>

<pallas_src>
import functools

import jax
import jax.numpy as jnp
from jax.experimental import pallas as pl
from jax.experimental.pallas import tpu as pltpu


def _mlm_head_kernel(x_ref, wt_ref, bt_ref, g_ref, beta_ref, wd_ref, bias_ref,
                     o_ref, h_ref):
    # x_ref:    (TN, H)   token tile (block index constant over the vocab axis)
    # wt_ref:   (H, H)    transform.dense.weight, pre-transposed to (in, out)
    # bt_ref:   (1, H)    transform.dense.bias
    # g_ref:    (1, H)    transform.LayerNorm.weight
    # beta_ref: (1, H)    transform.LayerNorm.bias
    # wd_ref:   (H, TV)   decoder.weight vocab tile, pre-transposed to (in, out)
    # bias_ref: (1, TV)   mlm bias vocab tile
    # o_ref:    (TN, TV)  logits tile
    # h_ref:    (TN, H)   VMEM scratch: post-transform activations, cached across vocab tiles

    # Transform runs only on the first vocab tile of each token tile.
    @pl.when(pl.program_id(1) == 0)
    def _():
        # dense: x @ Wt  (MXU, f32 accumulate; operands stay in their native dtype)
        h = jnp.dot(x_ref[...], wt_ref[...], preferred_element_type=jnp.float32)
        h = h + bt_ref[...].astype(jnp.float32)

        # exact GELU (erf-based), matching HF BERT "gelu"
        h = 0.5 * h * (1.0 + jax.lax.erf(h * 0.7071067811865476))

        # LayerNorm over hidden dim, eps = 1e-12 (BERT default) -- f32 math
        mu = jnp.mean(h, axis=-1, keepdims=True)
        var = jnp.mean(jnp.square(h - mu), axis=-1, keepdims=True)
        h = (h - mu) * jax.lax.rsqrt(var + 1e-12)
        h = h * g_ref[...].astype(jnp.float32) + beta_ref[...].astype(jnp.float32)

        h_ref[...] = h.astype(h_ref.dtype)

    # Decoder vocab tile: (TN, H) @ (H, TV) on the MXU, + shared bias.
    logits = jnp.dot(h_ref[...], wd_ref[...], preferred_element_type=jnp.float32)
    logits = logits + bias_ref[...].astype(jnp.float32)
    o_ref[...] = logits.astype(o_ref.dtype)


@functools.partial(jax.jit, static_argnames=("tile_n", "tile_v"))
def mlm_head(x, params, tile_n=512, tile_v=1024):
    """x: [B, S, H] -> logits [B, S, V]."""
    B, S, H = x.shape
    wt, bt, gamma, beta, wd, bias = (
        params["wt"], params["bt"], params["gamma"], params["beta"],
        params["wd"], params["bias"],
    )
    V = wd.shape[0]
    N = B * S

    # Adaptive, static tile sizing:
    #   * vocab tile is lane-dense (multiple of 128) and clamped to the padded vocab,
    #   * token tile is a multiple of 8 and clamped to the padded token count,
    # so tiny inputs don't pad all the way up to the default tiles.
    tile_v = min(tile_v, ((V + 127) // 128) * 128)
    tile_n = min(tile_n, max(8, ((N + 7) // 8) * 8))
    n_pad = (-N) % tile_n
    v_pad = (-V) % tile_v
    Np = N + n_pad
    Vp = V + v_pad

    # Flatten tokens; pad instead of asserting divisibility.
    x2 = x.reshape(N, H)
    if n_pad:
        x2 = jnp.pad(x2, ((0, n_pad), (0, 0)))

    # One-time wrapper-side transposes: MXU consumes (K, N)-layout RHS directly.
    wt_t = wt.T                    # (H_in, H_out)
    wd_t = wd.T                    # (H, V)
    bias2 = bias.reshape(1, V)
    if v_pad:
        wd_t = jnp.pad(wd_t, ((0, 0), (0, v_pad)))
        bias2 = jnp.pad(bias2, ((0, 0), (0, v_pad)))

    bt2 = bt.reshape(1, H)
    gamma2 = gamma.reshape(1, H)
    beta2 = beta.reshape(1, H)

    grid = (Np // tile_n, Vp // tile_v)
    itemsize = jnp.dtype(x.dtype).itemsize
    w_itemsize = jnp.dtype(wd_t.dtype).itemsize

    out = pl.pallas_call(
        _mlm_head_kernel,
        out_shape=jax.ShapeDtypeStruct((Np, Vp), x.dtype),
        grid=grid,
        in_specs=[
            pl.BlockSpec((tile_n, H), lambda i, j: (i, 0)),    # x token tile (resident over j)
            pl.BlockSpec((H, H), lambda i, j: (0, 0)),         # transform dense weight (in, out)
            pl.BlockSpec((1, H), lambda i, j: (0, 0)),         # transform dense bias
            pl.BlockSpec((1, H), lambda i, j: (0, 0)),         # LN gamma
            pl.BlockSpec((1, H), lambda i, j: (0, 0)),         # LN beta
            pl.BlockSpec((H, tile_v), lambda i, j: (0, j)),    # decoder weight vocab tile
            pl.BlockSpec((1, tile_v), lambda i, j: (0, j)),    # mlm bias vocab tile
        ],
        out_specs=pl.BlockSpec((tile_n, tile_v), lambda i, j: (i, j)),
        scratch_shapes=[pltpu.VMEM((tile_n, H), wd_t.dtype)],  # cached post-LN activations
        compiler_params=pltpu.CompilerParams(
            dimension_semantics=("parallel", "arbitrary"),
            vmem_limit_bytes=48 * 1024 * 1024,   # headroom on v5e/v6e (128 MiB) and v7x (64 MiB)
        ),
        cost_estimate=pl.CostEstimate(
            flops=2 * Np * H * (H + Vp),
            transcendentals=Np * H,
            bytes_accessed=(Np * H * itemsize
                            + (H * H + (Np // tile_n) * H * Vp) * w_itemsize
                            + Np * Vp * itemsize),
        ),
    )(x2, wt_t, bt2, gamma2, beta2, wd_t, bias2)

    # TODO(synk): for BERT-scale V, consider emitting bf16 logits (or fusing the loss)
    # to halve the dominant N x V writeback stream.
    return out[:N, :V].reshape(B, S, V)


def init_params(key, hidden_size, vocab_size, dtype=jnp.float32):
    k1, k2, k3, _ = jax.random.split(key, 4)
    scale_h = 1.0 / jnp.sqrt(hidden_size)
    return {
        # BertPredictionHeadTransform
        "wt": (jax.random.normal(k1, (hidden_size, hidden_size)) * scale_h).astype(dtype),
        "bt": (jax.random.normal(k2, (hidden_size,)) * 0.02).astype(dtype),
        "gamma": jnp.ones((hidden_size,), dtype),
        "beta": jnp.zeros((hidden_size,), dtype),
        # decoder (Linear(hidden, vocab, bias=False)) + separate bias param (init zeros)
        "wd": (jax.random.normal(k3, (vocab_size, hidden_size)) * scale_h).astype(dtype),
        "bias": jnp.zeros((vocab_size,), dtype),
    }


def _reference(x, params):
    """Pure-JAX reference of the same forward, for correctness check."""
    h = jnp.einsum("bsh,oh->bso", x, params["wt"]) + params["bt"]
    h = 0.5 * h * (1.0 + jax.lax.erf(h / jnp.sqrt(2.0)))
    mu = jnp.mean(h, axis=-1, keepdims=True)
    var = jnp.mean(jnp.square(h - mu), axis=-1, keepdims=True)
    h = (h - mu) * jax.lax.rsqrt(var + 1e-12)
    h = h * params["gamma"] + params["beta"]
    return jnp.einsum("bsh,vh->bsv", h, params["wd"]) + params["bias"]


if __name__ == "__main__":
    B, S, H, V = 2, 8, 128, 256   # small, TPU-tile-friendly shapes
    key = jax.random.PRNGKey(0)
    kx, kp = jax.random.split(key)

    x = jax.random.normal(kx, (B, S, H), dtype=jnp.float32)
    params = init_params(kp, H, V)

    out = mlm_head(x, params)      # exercises adaptive token tiling and vocab tiling
    out = jax.block_until_ready(out)

    ref = _reference(x, params)
    assert out.shape == (B, S, V), out.shape
    assert jnp.allclose(out, ref, atol=1e-4, rtol=1e-4), float(jnp.max(jnp.abs(out - ref)))

    print("KERNEL_OK")
</pallas_src>

<mosaic_0001>
module attributes {stable_mosaic.version = 11 : i64} {
  func.func @_mlm_head_kernel(%arg0: i32, %arg1: i32, %arg2: memref<16x128xf32, #tpu.memory_space<vmem>>, %arg3: memref<128x128xf32, #tpu.memory_space<vmem>>, %arg4: memref<1x128xf32, #tpu.memory_space<vmem>>, %arg5: memref<1x128xf32, #tpu.memory_space<vmem>>, %arg6: memref<1x128xf32, #tpu.memory_space<vmem>>, %arg7: memref<128x256xf32, #tpu.memory_space<vmem>>, %arg8: memref<1x256xf32, #tpu.memory_space<vmem>>, %arg9: memref<16x256xf32, #tpu.memory_space<vmem>>, %arg10: memref<16x128xf32, #tpu.memory_space<vmem>>) attributes {dimension_semantics = [#tpu.dimension_semantics<parallel>, #tpu.dimension_semantics<arbitrary>], iteration_bounds = array<i64: 1, 1>, scalar_prefetch = 0 : i64, scratch_operands = 1 : i64, tpu.core_type = #tpu.core_type<tc>, window_params = [{transform_indices = @transform_0, window_bounds = array<i64: 16, 128>}, {pipeline_mode = #tpu.pipeline_mode<synchronous>, transform_indices = @transform_1, window_bounds = array<i64: 128, 128>}, {pipeline_mode = #tpu.pipeline_mode<synchronous>, transform_indices = @transform_2, window_bounds = array<i64: 1, 128>}, {pipeline_mode = #tpu.pipeline_mode<synchronous>, transform_indices = @transform_3, window_bounds = array<i64: 1, 128>}, {pipeline_mode = #tpu.pipeline_mode<synchronous>, transform_indices = @transform_4, window_bounds = array<i64: 1, 128>}, {transform_indices = @transform_5, window_bounds = array<i64: 128, 256>}, {transform_indices = @transform_6, window_bounds = array<i64: 1, 256>}, {transform_indices = @transform_7, window_bounds = array<i64: 16, 256>}]} {
    %c0_i32 = arith.constant 0 : i32
    %0 = arith.cmpi eq, %arg1, %c0_i32 : i32
    %1 = arith.extui %0 : i1 to i32
    %c0_i32_0 = arith.constant 0 : i32
    %2 = arith.cmpi ne, %1, %c0_i32_0 : i32
    scf.if %2 {
      %c0_8 = arith.constant 0 : index
      %c0_9 = arith.constant 0 : index
      %10 = vector.load %arg2[%c0_8, %c0_9] : memref<16x128xf32, #tpu.memory_space<vmem>>, vector<16x128xf32>
      %c0_10 = arith.constant 0 : index
      %c0_11 = arith.constant 0 : index
      %11 = vector.load %arg3[%c0_10, %c0_11] : memref<128x128xf32, #tpu.memory_space<vmem>>, vector<128x128xf32>
      %cst_12 = arith.constant dense<0.000000e+00> : vector<16x128xf32>
      %12 = tpu.matmul %10, %11, %cst_12 {dimension_numbers = #tpu.dot_dimension_numbers<[1], [0], [0], [1], [0, 0, 1, 1], [], []>} : vector<16x128xf32>, vector<128x128xf32>, vector<16x128xf32> -> vector<16x128xf32>
      %c0_13 = arith.constant 0 : index
      %c0_14 = arith.constant 0 : index
      %13 = vector.load %arg4[%c0_13, %c0_14] : memref<1x128xf32, #tpu.memory_space<vmem>>, vector<1x128xf32>
      %14 = vector.broadcast %13 : vector<1x128xf32> to vector<16x128xf32>
      %15 = arith.addf %12, %14 : vector<16x128xf32>
      %cst_15 = arith.constant 5.000000e-01 : f32
      %16 = vector.broadcast %cst_15 : f32 to vector<16x128xf32>
      %17 = arith.mulf %16, %15 : vector<16x128xf32>
      %cst_16 = arith.constant 0.707106769 : f32
      %18 = vector.broadcast %cst_16 : f32 to vector<16x128xf32>
      %19 = arith.mulf %15, %18 : vector<16x128xf32>
      %20 = math.erf %19 : vector<16x128xf32>
      %cst_17 = arith.constant 1.000000e+00 : f32
      %21 = vector.broadcast %cst_17 : f32 to vector<16x128xf32>
      %22 = arith.addf %21, %20 : vector<16x128xf32>
      %23 = arith.mulf %17, %22 : vector<16x128xf32>
      %cst_18 = arith.constant dense<0.000000e+00> : vector<16xf32>
      %24 = vector.multi_reduction <add>, %23, %cst_18 [1] : vector<16x128xf32> to vector<16xf32>
      %25 = vector.shape_cast %24 : vector<16xf32> to vector<16x1xf32>
      %cst_19 = arith.constant 1.280000e+02 : f32
      %26 = vector.broadcast %cst_19 : f32 to vector<16x1xf32>
      %27 = arith.divf %25, %26 : vector<16x1xf32>
      %28 = vector.broadcast %27 : vector<16x1xf32> to vector<16x128xf32>
      %29 = arith.subf %23, %28 : vector<16x128xf32>
      %30 = arith.mulf %29, %29 : vector<16x128xf32>
      %cst_20 = arith.constant dense<0.000000e+00> : vector<16xf32>
      %31 = vector.multi_reduction <add>, %30, %cst_20 [1] : vector<16x128xf32> to vector<16xf32>
      %32 = vector.shape_cast %31 : vector<16xf32> to vector<16x1xf32>
      %cst_21 = arith.constant 1.280000e+02 : f32
      %33 = vector.broadcast %cst_21 : f32 to vector<16x1xf32>
      %34 = arith.divf %32, %33 : vector<16x1xf32>
      %35 = vector.broadcast %27 : vector<16x1xf32> to vector<16x128xf32>
      %36 = arith.subf %23, %35 : vector<16x128xf32>
      %cst_22 = arith.constant 9.99999996E-13 : f32
      %37 = vector.broadcast %cst_22 : f32 to vector<16x1xf32>
      %38 = arith.addf %34, %37 : vector<16x1xf32>
      %39 = math.rsqrt %38 : vector<16x1xf32>
      %40 = vector.broadcast %39 : vector<16x1xf32> to vector<16x128xf32>
      %41 = arith.mulf %36, %40 : vector<16x128xf32>
      %c0_23 = arith.constant 0 : index
      %c0_24 = arith.constant 0 : index
      %42 = vector.load %arg5[%c0_23, %c0_24] : memref<1x128xf32, #tpu.memory_space<vmem>>, vector<1x128xf32>
      %43 = vector.broadcast %42 : vector<1x128xf32> to vector<16x128xf32>
      %44 = arith.mulf %41, %43 : vector<16x128xf32>
      %c0_25 = arith.constant 0 : index
      %c0_26 = arith.constant 0 : index
      %45 = vector.load %arg6[%c0_25, %c0_26] : memref<1x128xf32, #tpu.memory_space<vmem>>, vector<1x128xf32>
      %46 = vector.broadcast %45 : vector<1x128xf32> to vector<16x128xf32>
      %47 = arith.addf %44, %46 : vector<16x128xf32>
      %c0_27 = arith.constant 0 : index
      %c0_28 = arith.constant 0 : index
      %48 = vector.load %arg10[%c0_27, %c0_28] : memref<16x128xf32, #tpu.memory_space<vmem>>, vector<16x128xf32>
      tpu.vector_store %arg10[%c0_27, %c0_28], %47 {strides = array<i32>} : memref<16x128xf32, #tpu.memory_space<vmem>>, vector<16x128xf32>,
    } else {
    }
    %c0 = arith.constant 0 : index
    %c0_1 = arith.constant 0 : index
    %3 = vector.load %arg10[%c0, %c0_1] : memref<16x128xf32, #tpu.memory_space<vmem>>, vector<16x128xf32>
    %c0_2 = arith.constant 0 : index
    %c0_3 = arith.constant 0 : index
    %4 = vector.load %arg7[%c0_2, %c0_3] : memref<128x256xf32, #tpu.memory_space<vmem>>, vector<128x256xf32>
    %cst = arith.constant dense<0.000000e+00> : vector<16x256xf32>
    %5 = tpu.matmul %3, %4, %cst {dimension_numbers = #tpu.dot_dimension_numbers<[1], [0], [0], [1], [0, 0, 1, 1], [], []>} : vector<16x128xf32>, vector<128x256xf32>, vector<16x256xf32> -> vector<16x256xf32>
    %c0_4 = arith.constant 0 : index
    %c0_5 = arith.constant 0 : index
    %6 = vector.load %arg8[%c0_4, %c0_5] : memref<1x256xf32, #tpu.memory_space<vmem>>, vector<1x256xf32>
    %7 = vector.broadcast %6 : vector<1x256xf32> to vector<16x256xf32>
    %8 = arith.addf %5, %7 : vector<16x256xf32>
    %c0_6 = arith.constant 0 : index
    %c0_7 = arith.constant 0 : index
    %9 = vector.load %arg9[%c0_6, %c0_7] : memref<16x256xf32, #tpu.memory_space<vmem>>, vector<16x256xf32>
    tpu.vector_store %arg9[%c0_6, %c0_7], %8 {strides = array<i32>} : memref<16x256xf32, #tpu.memory_space<vmem>>, vector<16x256xf32>,
    return
  }
  func.func @transform_0(%arg0: i32, %arg1: i32) -> (i32, i32) {
    %c0_i32 = arith.constant 0 : i32
    %c0_i32_0 = arith.constant 0 : i32
    return %arg0, %c0_i32 : i32, i32
  }
  func.func @transform_1(%arg0: i32, %arg1: i32) -> (i32, i32) {
    %c0_i32 = arith.constant 0 : i32
    %c0_i32_0 = arith.constant 0 : i32
    %c0_i32_1 = arith.constant 0 : i32
    return %c0_i32, %c0_i32_0 : i32, i32
  }
  func.func @transform_2(%arg0: i32, %arg1: i32) -> (i32, i32) {
    %c0_i32 = arith.constant 0 : i32
    %c0_i32_0 = arith.constant 0 : i32
    %c0_i32_1 = arith.constant 0 : i32
    return %c0_i32, %c0_i32_0 : i32, i32
  }
  func.func @transform_3(%arg0: i32, %arg1: i32) -> (i32, i32) {
    %c0_i32 = arith.constant 0 : i32
    %c0_i32_0 = arith.constant 0 : i32
    %c0_i32_1 = arith.constant 0 : i32
    return %c0_i32, %c0_i32_0 : i32, i32
  }
  func.func @transform_4(%arg0: i32, %arg1: i32) -> (i32, i32) {
    %c0_i32 = arith.constant 0 : i32
    %c0_i32_0 = arith.constant 0 : i32
    %c0_i32_1 = arith.constant 0 : i32
    return %c0_i32, %c0_i32_0 : i32, i32
  }
  func.func @transform_5(%arg0: i32, %arg1: i32) -> (i32, i32) {
    %c0_i32 = arith.constant 0 : i32
    %c0_i32_0 = arith.constant 0 : i32
    return %c0_i32, %arg1 : i32, i32
  }
  func.func @transform_6(%arg0: i32, %arg1: i32) -> (i32, i32) {
    %c0_i32 = arith.constant 0 : i32
    %c0_i32_0 = arith.constant 0 : i32
    return %c0_i32, %arg1 : i32, i32
  }
  func.func @transform_7(%arg0: i32, %arg1: i32) -> (i32, i32) {
    %c0_i32 = arith.constant 0 : i32
    return %arg0, %arg1 : i32, i32
  }
}

</mosaic_0001>

<bundles_post_ra>
// kernel: mlm_head.1
= control target key start
LH: loop header
LB: loop body
LE: loop exit
PB: predicated region body
PF: predicated region fallthrough
CT: control target
= control target key end

     0   :  { %s632_s0 = inlined_call_operand.vmem [shape: f32[16,128], index: 0, kind: input, shape index: {}]   ;;  %s633_s1 = inlined_call_operand.vmem [shape: f32[128,128], index: 1, kind: input, shape index: {}]   ;;  %s634_s2 = inlined_call_operand.vmem [shape: f32[1,128], index: 2, kind: input, shape index: {}]   ;;  %s635_s3 = inlined_call_operand.vmem [shape: f32[1,128], index: 3, kind: input, shape index: {}]   ;;  %s636_s4 = inlined_call_operand.vmem [shape: f32[1,128], index: 4, kind: input, shape index: {}]   ;;  %s637_s5 = inlined_call_operand.vmem [shape: f32[128,256], index: 5, kind: input, shape index: {}]   ;;  %s638_s6 = inlined_call_operand.vmem [shape: f32[1,256], index: 6, kind: input, shape index: {}]   ;;  %s639_s7 = inlined_call_operand.hbm [shape: f32[16,256], index: 7, kind: output, shape index: {}]  }
   0x1   :  { %v48_v0 = vld [vmem:[%s633_s1 + $0x78] sm:$0xff]  ;;  %v47_v1 = vld [vmem:[%s633_s1 + $0x70] sm:$0xff]  ;;  %v46_v2 = vld [vmem:[%s633_s1 + $0x68] sm:$0xff] }
   0x2   :  { %53 = vmatpush.msra.mxu0 %v48_v0  ;;  %335 = vmatpush.msra.mxu3 %v48_v0  ;;  %v45_v3 = vld [vmem:[%s633_s1 + $0x60] sm:$0xff]  ;;  %v44_v4 = vld [vmem:[%s633_s1 + $0x58] sm:$0xff] }
   0x4   :  { %54 = vmatpush.msra.mxu0 %v47_v1  ;;  %336 = vmatpush.msra.mxu3 %v47_v1 }
   0x6   :  { %55 = vmatpush.msra.mxu0 %v46_v2  ;;  %337 = vmatpush.msra.mxu3 %v46_v2 }
   0x8   :  { %56 = vmatpush.msra.mxu0 %v45_v3  ;;  %338 = vmatpush.msra.mxu3 %v45_v3 }
   0x9   :  { %12 = vsyncpa [#allocation4], 0  ;;  %v43_v5 = vld [vmem:[%s633_s1 + $0x50] sm:$0xff]  ;;  %v42_v6 = vld [vmem:[%s633_s1 + $0x48] sm:$0xff]  ;;  %s321_s9 = sshll.u32 %s639_s7, 4  ;;  %s397_s10 = smov 16   ;;  %s322_s9 = int_to_ptr.hbm [resolvable:$true] %s321_s9 }
   0xa   :  { %57 = vmatpush.msra.mxu0 %v44_v4  ;;  %339 = vmatpush.msra.mxu3 %v44_v4  ;;  %v41_v7 = vld [vmem:[%s633_s1 + $0x40] sm:$0xff]  ;;  %v40_v8 = vld [vmem:[%s633_s1 + $0x38] sm:$0xff]  ;;  %v39_v9 = vld [vmem:[%s633_s1 + $0x30] sm:$0xff] }
   0xb   :  { %v38_v10 = vld [vmem:[%s633_s1 + $0x28] sm:$0xff]  ;;  %v37_v11 = vld [vmem:[%s633_s1 + $0x20] sm:$0xff]  ;;  %v36_v12 = vld [vmem:[%s633_s1 + $0x18] sm:$0xff] }
   0xc   :  { %58 = vmatpush.msra.mxu0 %v43_v5  ;;  %340 = vmatpush.msra.mxu3 %v43_v5  ;;  %v35_v13 = vld [vmem:[%s633_s1 + $0x10] sm:$0xff]  ;;  %v34_v14 = vld [vmem:[%s633_s1 + $0x8] sm:$0xff]  ;;  %v33_v15 = vld [vmem:[%s633_s1] sm:$0xff] }
   0xd   :  { %v31_v16 = vld [vmem:[%s632_s0] sm:$0xff]  ;;  %v32_v17 = vld [vmem:[%s632_s0 + $0x8] sm:$0xff] }
   0xe   :  { %59 = vmatpush.msra.mxu0 %v42_v6  ;;  %341 = vmatpush.msra.mxu3 %v42_v6  ;;  %v355_v18 = vld [vmem:[%s634_s2] ss:$0 sm:$0xff] }
  0x10   :  { %60 = vmatpush.msra.mxu0 %v41_v7  ;;  %342 = vmatpush.msra.mxu3 %v41_v7 }
  0x12   :  { %61 = vmatpush.msra.mxu0 %v40_v8  ;;  %343 = vmatpush.msra.mxu3 %v40_v8 }
  0x14   :  { %62 = vmatpush.msra.mxu0 %v39_v9  ;;  %344 = vmatpush.msra.mxu3 %v39_v9 }
  0x16   :  { %63 = vmatpush.msra.mxu0 %v38_v10  ;;  %345 = vmatpush.msra.mxu3 %v38_v10 }
  0x18   :  { %64 = vmatpush.msra.mxu0 %v37_v11  ;;  %346 = vmatpush.msra.mxu3 %v37_v11 }
  0x1a   :  { %65 = vmatpush.msra.mxu0 %v36_v12  ;;  %347 = vmatpush.msra.mxu3 %v36_v12 }
  0x1c   :  { %66 = vmatpush.msra.mxu0 %v35_v13  ;;  %348 = vmatpush.msra.mxu3 %v35_v13 }
  0x1e   :  { %67 = vmatpush.msra.mxu0 %v34_v14  ;;  %349 = vmatpush.msra.mxu3 %v34_v14 }
  0x20   :  { %68 = vmatpush.msra.mxu0 %v33_v15  ;;  %350 = vmatpush.msra.mxu3 %v33_v15 }
  0x21   :  { %69 = vmatmul.f32.vlgmr.msra.gmra.mxu0 %v31_v16  ;;  %72 = vmatmul.f32.vlgmr.msra.gmra.mxu3 %v32_v17 }
  0x9e   :  { %v70_v19 = vpop.f32.mrf.mxu0 }
  0x9f   :  { %v495_v20 = vadd.f32 %v355_v18, %v70_v19 }
  0xa1   :  { %v78_v21 = vmul.f32 0.70710677, %v495_v20 }
  0xa3   :  { %v80_v22 = vmul.f32 %v78_v21, %v78_v21 }
  0xa4   :  { %v73_v23 = vpop.f32.mrf.mxu3 }
  0xa5   :  { %v81_v24 = vmin.f32 %v80_v22, 16.0  ;;  %v498_v25 = vadd.f32 %v355_v18, %v73_v23 }
  0xa7   :  { %v82_v26 = vmul.f32 2.1237322e-06, %v81_v24  ;;  %v501_v27 = vmul.f32 0.70710677, %v498_v25  ;;  %v93_v28 = vmul.f32 3.8918573e-05, %v81_v24 }
  0xa9   :  { %v83_v29 = vadd.f32 0.00028619796, %v82_v26  ;;  %v120_v30 = vmul.f32 %v501_v27, %v501_v27  ;;  %v94_v31 = vadd.f32 0.001143296, %v93_v28 }
  0xab   :  { %v84_v32 = vmul.f32 %v83_v29, %v81_v24  ;;  %v121_v33 = vmin.f32 %v120_v30, 16.0  ;;  %v95_v34 = vmul.f32 %v94_v31, %v81_v24  ;;  %v76_v31 = vmul.f32 0.5, %v495_v20  ;;  %v258_v20 = vld [vmem:[%s637_s5 + $0xf8] sm:$0xff] }
  0xac   :  { %288 = vmatpush.msra.mxu2 %v258_v20 }
  0xad   :  { %v122_v35 = vmul.f32 2.1237322e-06, %v121_v33  ;;  %v133_v36 = vmul.f32 3.8918573e-05, %v121_v33  ;;  %v85_v37 = vadd.f32 0.0036580483, %v84_v32 }
  0xae   :  { %v96_v38 = vadd.f32 0.014752088, %v95_v34 }
  0xaf   :  { %v123_v39 = vadd.f32 0.00028619796, %v122_v35  ;;  %v134_v40 = vadd.f32 0.001143296, %v133_v36  ;;  %v86_v44 = vmul.f32 %v85_v37, %v81_v24 }
  0xb0   :  { %v97_v41 = vmul.f32 %v96_v38, %v81_v24  ;;  %v77_v38 = vmul.f32 0.5, %v498_v25  ;;  %v256_v25 = vld [vmem:[%s637_s5 + $0xe8] sm:$0xff] }
  0xb1   :  { %v124_v42 = vmul.f32 %v123_v39, %v121_v33  ;;  %v135_v43 = vmul.f32 %v134_v40, %v121_v33  ;;  %v87_v50 = vadd.f32 0.05243302, %v86_v44  ;;  %v394_v40 = vmov 128.0   ;;  %289 = vmatpush.msra.mxu2 %v256_v25 }
  0xb2   :  { %v98_v45 = vadd.f32 0.112945676, %v97_v41 }
  0xb3   :  { %v125_v46 = vadd.f32 0.0036580483, %v124_v42  ;;  %v136_v47 = vadd.f32 0.014752088, %v135_v43  ;;  %v88_v56 = vmul.f32 %v87_v50, %v81_v24  ;;  %v255_v43 = vld [vmem:[%s637_s5 + $0xe0] sm:$0xff] }
  0xb4   :  { %v99_v48 = vmul.f32 %v98_v45, %v81_v24 }
  0xb5   :  { %v137_v49 = vmul.f32 %v136_v47, %v121_v33  ;;  %v126_v52 = vmul.f32 %v125_v46, %v121_v33  ;;  %v89_v61 = vadd.f32 0.18741608, %v88_v56  ;;  %v253_v56 = vld [vmem:[%s637_s5 + $0xd0] sm:$0xff] }
  0xb6   :  { %v100_v51 = vadd.f32 0.4994258, %v99_v48 }
  0xb7   :  { %v138_v53 = vadd.f32 0.112945676, %v137_v49  ;;  %v127_v58 = vadd.f32 0.05243302, %v126_v52  ;;  %v90_v1 = vmul.f32 %v89_v61, %v81_v24  ;;  %v250_v61 = vld [vmem:[%s637_s5 + $0xb8] sm:$0xff] }
  0xb8   :  { %v101_v54 = vmul.f32 %v100_v51, %v81_v24 }
  0xb9   :  { %v139_v55 = vmul.f32 %v138_v53, %v121_v33  ;;  %v128_v62 = vmul.f32 %v127_v58, %v121_v33  ;;  %v91_v5 = vadd.f32 1.1283791, %v90_v1  ;;  %v251_v58 = vld [vmem:[%s637_s5 + $0xc0] sm:$0xff]  ;;  %v246_v1 = vld [vmem:[%s637_s5 + $0x98] sm:$0xff] }
  0xba   :  { %v102_v57 = vadd.f32 1.0, %v101_v54 }
  0xbb   :  { %v140_v59 = vadd.f32 0.4994258, %v139_v55  ;;  %v129_v2 = vadd.f32 0.18741608, %v128_v62  ;;  %v92_v13 = vmul.f32 %v91_v5, %v78_v21  ;;  %v247_v62 = vld [vmem:[%s637_s5 + $0xa0] sm:$0xff]  ;;  %v242_v5 = vld [vmem:[%s637_s5 + $0x78] sm:$0xff] }
  0xbc   :  { %358 = vrcp.f32 %v102_v57  ;;  %v114_v6 = vand.u32 2147483648, %v102_v57  ;;  %v112_v10 = vand.u32 2147483647, %v102_v57  ;;  %vm108_vm1 = vweird.f32 %v102_v57 }
  0xbd   :  { %v141_v60 = vmul.f32 %v140_v59, %v121_v33  ;;  %v130_v8 = vmul.f32 %v129_v2, %v121_v33  ;;  %v252_v59 = vld [vmem:[%s637_s5 + $0xc8] sm:$0xff]  ;;  %v243_v2 = vld [vmem:[%s637_s5 + $0x80] sm:$0xff] }
  0xbe   :  { %v115_v14 = vor.u32 1.1754944e-38, %v114_v6  ;;  %vm113_vm3 = vcmp.eq.f32.partialorder %v112_v10, 8.507059e+37  ;;  %v239_v6 = vld [vmem:[%s637_s5 + $0x60] sm:$0xff] }
  0xbf   :  { %v142_v63 = vadd.f32 1.0, %v141_v60  ;;  %v131_v16 = vadd.f32 1.1283791, %v130_v8  ;;  %v249_v60 = vld [vmem:[%s637_s5 + $0xb0] sm:$0xff]  ;;  %v235_v10 = vld [vmem:[%s637_s5 + $0x40] sm:$0xff] }
  0xc0   :  { %v237_v8 = vld [vmem:[%s637_s5 + $0x50] sm:$0xff] }
  0xc1   :  { %360 = vrcp.f32 %v142_v63  ;;  %v154_v18 = vand.u32 2147483648, %v142_v63  ;;  %v152_v23 = vand.u32 2147483647, %v142_v63  ;;  %vm148_vm5 = vweird.f32 %v142_v63 }
  0xc2   :  { %v359_v0 = vpop.eup %358  ;;  %v132_v30 = vmul.f32 %v131_v16, %v501_v27  ;;  %362 = vrcp.f32 %v394_v40  ;;  %v257_v27 = vld [vmem:[%s637_s5 + $0xf0] sm:$0xff] }
  0xc3   :  { %v104_v3 = vmul.f32 %v359_v0, %v102_v57  ;;  %vm109_vm0 = vweird.f32 %v359_v0  ;;  %v155_v29 = vor.u32 1.1754944e-38, %v154_v18  ;;  %vm153_vm7 = vcmp.eq.f32.partialorder %v152_v23, 8.507059e+37  ;;  %265 = vmatpush.msra.mxu1 %v257_v27  ;;  %v254_v57 = vld [vmem:[%s637_s5 + $0xd8] sm:$0xff]  ;;  %v229_v16 = vld [vmem:[%s637_s5 + $0x10] sm:$0xff]  ;;  %v227_v18 = vld [vmem:[%s637_s5] sm:$0xff] }
  0xc4   :  { %vm110_vm2 = vmor %vm108_vm1, %vm109_vm0  ;;  %290 = vmatpush.msra.mxu2 %v254_v57 }
  0xc5   :  { %v105_v4 = vsub.f32 1.0, %v104_v3  ;;  %266 = vmatpush.msra.mxu1 %v255_v43  ;;  %v244_v3 = vld [vmem:[%s637_s5 + $0x88] sm:$0xff] }
  0xc6   :  { %291 = vmatpush.msra.mxu2 %v252_v59 }
  0xc7   :  { %v361_v7 = vpop.eup %360  ;;  %v106_v9 = vmul.f32 %v359_v0, %v105_v4  ;;  %267 = vmatpush.msra.mxu1 %v253_v56  ;;  %v241_v4 = vld [vmem:[%s637_s5 + $0x70] sm:$0xff] }
  0xc8   :  { %v144_v11 = vmul.f32 %v361_v7, %v142_v63  ;;  %vm149_vm4 = vweird.f32 %v361_v7  ;;  %v363_v41 = vpop.eup %362  ;;  %292 = vmatpush.msra.mxu2 %v250_v61  ;;  %v248_v63 = vld [vmem:[%s637_s5 + $0xa8] sm:$0xff] }
  0xc9   :  { %v107_v12 = vadd.f32 %v359_v0, %v106_v9  ;;  %vm150_vm6 = vmor %vm148_vm5, %vm149_vm4  ;;  %v169_v42 = vmul.f32 128.0, %v363_v41  ;;  %vm173_vm8 = vweird.f32 %v363_v41  ;;  %268 = vmatpush.msra.mxu1 %v251_v58  ;;  %v238_v9 = vld [vmem:[%s637_s5 + $0x58] sm:$0xff] }
  0xca   :  { %v145_v15 = vsub.f32 1.0, %v144_v11  ;;  %293 = vmatpush.msra.mxu2 %v248_v63  ;;  %v236_v11 = vld [vmem:[%s637_s5 + $0x48] sm:$0xff] }
  0xcb   :  { %v111_v17 = vsel %vm110_vm2, %v359_v0, %v107_v12  ;;  %v170_v44 = vsub.f32 1.0, %v169_v42  ;;  %269 = vmatpush.msra.mxu1 %v249_v60  ;;  %v245_v0 = vld [vmem:[%s637_s5 + $0x90] sm:$0xff] }
  0xcc   :  { %v116_v19 = vsel %vm113_vm3, %v115_v14, %v111_v17  ;;  %v146_v22 = vmul.f32 %v361_v7, %v145_v15  ;;  %294 = vmatpush.msra.mxu2 %v246_v1  ;;  %v233_v12 = vld [vmem:[%s637_s5 + $0x30] sm:$0xff]  ;;  %v231_v14 = vld [vmem:[%s637_s5 + $0x20] sm:$0xff]  ;;  %v232_v15 = vld [vmem:[%s637_s5 + $0x28] sm:$0xff] }
  0xcd   :  { %v117_v24 = vmul.f32 %v116_v19, %v92_v13  ;;  %v171_v45 = vmul.f32 %v363_v41, %v170_v44  ;;  %270 = vmatpush.msra.mxu1 %v247_v62  ;;  %v234_v13 = vld [vmem:[%s637_s5 + $0x38] sm:$0xff]  ;;  %v228_v19 = vld [vmem:[%s637_s5 + $0x8] sm:$0xff] }
  0xce   :  { %v147_v26 = vadd.f32 %v361_v7, %v146_v22  ;;  %295 = vmatpush.msra.mxu2 %v244_v3  ;;  %v230_v17 = vld [vmem:[%s637_s5 + $0x18] sm:$0xff] }
  0xcf   :  { %v333_v28 = vclamps-f32 %v117_v24, 1.0  ;;  %v172_v46 = vadd.f32 %v363_v41, %v171_v45  ;;  %271 = vmatpush.msra.mxu1 %v245_v0 }
  0xd0   :  { %v151_v21 = vsel %vm150_vm6, %v361_v7, %v147_v26  ;;  %296 = vmatpush.msra.mxu2 %v242_v5  ;;  %v240_v7 = vld [vmem:[%s637_s5 + $0x68] sm:$0xff] }
  0xd1   :  { %v160_v32 = vadd.f32 1.0, %v333_v28  ;;  %v156_v33 = vsel %vm153_vm7, %v155_v29, %v151_v21  ;;  %v520_v47 = vsel %vm173_vm8, %v363_v41, %v172_v46  ;;  %272 = vmatpush.msra.mxu1 %v243_v2  ;;  %v357_v41 = vld [vmem:[%s636_s4] ss:$0 sm:$0xff]  ;;  %s395_s4 = smov [#allocation3]  }
  0xd2   :  { %v157_v34 = vmul.f32 %v156_v33, %v132_v30  ;;  %297 = vmatpush.msra.mxu2 %v240_v7  ;;  %s319_s29 = sshll.u32 %s395_s4, 4  ;;  %s320_s29 = int_to_ptr.vmem [resolvable:$true] %s319_s29 }
  0xd3   :  { %v162_v35 = vmul.f32 %v160_v32, %v76_v31  ;;  %273 = vmatpush.msra.mxu1 %v241_v4 }
  0xd4   :  { %v334_v36 = vclamps-f32 %v157_v34, 1.0  ;;  %298 = vmatpush.msra.mxu2 %v238_v9 }
  0xd5   :  { %164 = vadd.xlane.f32.xlu0 %v162_v35  ;;  %274 = vmatpush.msra.mxu1 %v239_v6 }
  0xd6   :  { %v161_v37 = vadd.f32 1.0, %v334_v36  ;;  %299 = vmatpush.msra.mxu2 %v236_v11 }
  0xd7   :  { %275 = vmatpush.msra.mxu1 %v237_v8 }
  0xd8   :  { %v163_v39 = vmul.f32 %v161_v37, %v77_v38  ;;  %300 = vmatpush.msra.mxu2 %v234_v13  ;;  %v356_v37 = vld [vmem:[%s635_s3] ss:$0 sm:$0xff] }
  0xd9   :  { %276 = vmatpush.msra.mxu1 %v235_v10 }
  0xda   :  { %301 = vmatpush.msra.mxu2 %v232_v15 }
  0xdb   :  { %277 = vmatpush.msra.mxu1 %v233_v12 }
  0xdc   :  { %302 = vmatpush.msra.mxu2 %v230_v17 }
  0xdd   :  { %166 = vadd.xlane.f32.xlu0 %v163_v39  ;;  %278 = vmatpush.msra.mxu1 %v231_v14 }
  0xde   :  { %303 = vmatpush.msra.mxu2 %v228_v19 }
  0xdf   :  { %279 = vmatpush.msra.mxu1 %v229_v16 }
  0xe1   :  { %280 = vmatpush.msra.mxu1 %v227_v18 }
 0x148   :  { %v165_v48 = vpop.xlane.xlu0 %164 }
 0x149   :  { %v175_v49 = vmul.f32 %v520_v47, %v165_v48  ;;  %v259_v48 = vld [vmem:[%s638_s6] sm:$0x3]  ;;  %s396_s6 = smov 256  }
 0x14b   :  { %v523_v50 = vsub.f32 %v162_v35, %v175_v49  ;;  %v261_v49 = vperm.slane %v259_v48, 0 }
 0x14d   :  { %v179_v51 = vmul.f32 %v523_v50, %v523_v50 }
 0x14f   :  { %181 = vadd.xlane.f32.xlu1 %v179_v51 }
 0x150   :  { %v167_v52 = vpop.xlane.xlu0 %166 }
 0x151   :  { %v176_v53 = vmul.f32 %v520_v47, %v167_v52  ;;  %v262_v52 = vperm.slane %v259_v48, 1 }
 0x153   :  { %v528_v54 = vsub.f32 %v163_v39, %v176_v53 }
 0x155   :  { %v180_v55 = vmul.f32 %v528_v54, %v528_v54 }
 0x157   :  { %183 = vadd.xlane.f32.xlu1 %v180_v55 }
 0x1c2   :  { %v182_v22 = vpop.xlane.xlu1 %181 }
 0x1c3   :  { %v185_v23 = vmul.f32 %v182_v22, %v520_v47 }
 0x1c5   :  { %v187_v24 = vadd.f32 1e-12, %v185_v23 }
 0x1c7   :  { %364 = vrsqrt.f32 %v187_v24  ;;  %vm195_vm10 = vweird.f32 %v187_v24 }
 0x1ca   :  { %v184_v26 = vpop.xlane.xlu1 %183 }
 0x1cb   :  { %v186_v28 = vmul.f32 %v184_v26, %v520_v47 }
 0x1cd   :  { %v365_v29 = vpop.eup %364  ;;  %v188_v30 = vadd.f32 1e-12, %v186_v28 }
 0x1ce   :  { %v190_v21 = vmul.f32 %v365_v29, %v187_v24  ;;  %vm196_vm9 = vweird.f32 %v365_v29 }
 0x1cf   :  { %366 = vrsqrt.f32 %v188_v30  ;;  %vm197_vm11 = vmor %vm195_vm10, %vm196_vm9  ;;  %vm205_vm13 = vweird.f32 %v188_v30 }
 0x1d0   :  { %v191_v31 = vmul.f32 %v365_v29, %v190_v21 }
 0x1d2   :  { %v192_v32 = vmul.f32 0.5, %v191_v31 }
 0x1d4   :  { %v193_v33 = vsub.f32 1.5, %v192_v32 }
 0x1d5   :  { %v367_v34 = vpop.eup %366 }
 0x1d6   :  { %v194_v35 = vmul.f32 %v365_v29, %v193_v33  ;;  %v200_v36 = vmul.f32 %v367_v34, %v188_v30  ;;  %vm206_vm12 = vweird.f32 %v367_v34 }
 0x1d7   :  { %vm207_vm14 = vmor %vm205_vm13, %vm206_vm12 }
 0x1d8   :  { %v201_v38 = vmul.f32 %v367_v34, %v200_v36  ;;  %v198_v39 = vsel %vm197_vm11, %v365_v29, %v194_v35 }
 0x1d9   :  { %v209_v40 = vmul.f32 %v198_v39, %v523_v50 }
 0x1da   :  { %v202_v42 = vmul.f32 0.5, %v201_v38 }
 0x1db   :  { %v215_v27 = vmul.f32 %v356_v37, %v209_v40 }
 0x1dc   :  { %v203_v20 = vsub.f32 1.5, %v202_v42 }
 0x1dd   :  { %v221_v43 = vadd.f32 %v357_v41, %v215_v27 }
 0x1de   :  { %v204_v25 = vmul.f32 %v367_v34, %v203_v20 }
 0x1df   :  { %281 = vmatmul.f32.vlgmr.msra.gmra.mxu1 %v221_v43  ;;  %304 = vmatmul.f32.vlgmr.msra.gmra.mxu2 %v221_v43 }
 0x1e0   :  { %v208_v44 = vsel %vm207_vm14, %v367_v34, %v204_v25 }
 0x1e1   :  { %v210_v45 = vmul.f32 %v208_v44, %v528_v54 }
 0x1e3   :  { %v216_v46 = vmul.f32 %v356_v37, %v210_v45 }
 0x1e5   :  { %v222_v47 = vadd.f32 %v357_v41, %v216_v46 }
 0x1e7   :  { %284 = vmatmul.f32.gmra.mxu1 %v222_v47  ;;  %307 = vmatmul.f32.gmra.mxu2 %v222_v47 }
 0x25c   :  { %v282_v50 = vpop.f32.mrf.mxu1 }
 0x25d   :  { %v283_v51 = vadd.f32 %v282_v50, %v261_v49 }
 0x25f   :  { %311 = vst [vmem:[#allocation3] sm:$0xff] %v283_v51 }
 0x262   :  { %v305_v53 = vpop.f32.mrf.mxu2 }
 0x263   :  { %v306_v55 = vadd.f32 %v305_v53, %v262_v52 }
 0x264   :  { %v285_v56 = vpop.f32.mrf.mxu1 }
 0x265   :  { %312 = vst [vmem:[#allocation3 + $0x8] sm:$0xff] %v306_v55  ;;  %v286_v57 = vadd.f32 %v285_v56, %v261_v49 }
 0x267   :  { %313 = vst [vmem:[#allocation3 + $0x10] sm:$0xff] %v286_v57 }
 0x26a   :  { %v308_v54 = vpop.f32.mrf.mxu2 }
 0x26b   :  { %v309_v58 = vadd.f32 %v308_v54, %v262_v52 }
 0x26d   :  { %314 = vst [vmem:[#allocation3 + $0x18] sm:$0xff] %v309_v58 }
 0x26e   :  { %327 = dma.vmem_to_hbm [thread:$0]  %s320_s29, 512, %s322_s9, [#allocation4], %s396_s6, %s396_s6, %s397_s10  }
 0x26f   :  { %392 = dma.done.wait [#allocation4], 512  }
 0x270   :  { %393 = vsyncadd [#allocation4], 4294966784 }
 0x271   :  { %332 = vsyncpa [#allocation4], 1 }

</bundles_post_ra>
